<compile_context>
chip_gen: v5e
topology: v5e:2x2
jax: 0.10.0
libtpu: 0.0.40
codegen_flags: <defaults>
</compile_context>

<pallas_src>
import functools

import jax
import jax.numpy as jnp
from jax.experimental import pallas as pl
from jax.experimental.pallas import tpu as pltpu


def _largest_divisor_tile(n, target, align):
    """Largest multiple of `align` that divides n and is <= target.
    Falls back to n itself (full dimension) when no such divisor exists."""
    n, target = int(n), int(target)
    if n <= target:
        return n
    t = (target // align) * align
    while t >= align:
        if n % t == 0:
            return t
        t -= align
    return n


def _vmem_limit_bytes():
    """Scoped-VMEM limit ~= 3/4 of physical capacity (v7x: 64 MiB -> 48 MiB,
    v5e/v6e: 128 MiB -> 96 MiB).  Falls back to a v7x-safe 48 MiB."""
    cap = 64 << 20
    try:
        cap = int(pltpu.get_tpu_info().vmem_capacity_bytes)
    except Exception:
        pass
    return int(min(cap * 3 // 4, 96 << 20))


# ---------------------------------------------------------------------------
# Fused single-pass kernel: pool -> FC -> ReLU -> FC -> sigmoid -> x * scale
# on a resident (Bt, C, L) block (full L).
# ---------------------------------------------------------------------------
def _se_fused_kernel(x_ref, w1t_ref, b1_ref, w2t_ref, b2_ref, o_ref, *, inv_l):
    x = x_ref[...]                                                    # (Bt, C, L)
    pooled = jnp.sum(x.astype(jnp.float32), axis=-1) * inv_l          # (Bt, C)
    h = jnp.dot(pooled, w1t_ref[...],
                preferred_element_type=jnp.float32) + b1_ref[...]     # (Bt, Cr)
    h = jnp.maximum(h, 0.0)
    s = jnp.dot(h, w2t_ref[...],
                preferred_element_type=jnp.float32) + b2_ref[...]     # (Bt, C)
    scale = jax.nn.sigmoid(s)
    o_ref[...] = (x.astype(jnp.float32) * scale[:, :, None]).astype(o_ref.dtype)


# ---------------------------------------------------------------------------
# Two-pass fallback, pass 1: streaming sum over L (lane-wide accumulator),
# then FC -> ReLU -> FC -> sigmoid on the pooled (Bt, C) vector.
# ---------------------------------------------------------------------------
def _squeeze_fc_kernel(x_ref, w1t_ref, b1_ref, w2t_ref, b2_ref, scale_ref,
                       acc_ref, *, inv_l):
    li = pl.program_id(1)

    @pl.when(li == 0)
    def _():
        acc_ref[...] = jnp.zeros_like(acc_ref)

    # Lane-wide f32 accumulation: only VPU adds on the streaming path; the
    # single cross-lane (XLU) reduce happens once, in the finalize branch.
    acc_ref[...] += x_ref[...].astype(jnp.float32)                    # (Bt, C, Lt)

    @pl.when(li == pl.num_programs(1) - 1)
    def _():
        pooled = jnp.sum(acc_ref[...], axis=-1) * inv_l               # true-L mean
        h = jnp.dot(pooled, w1t_ref[...],
                    preferred_element_type=jnp.float32) + b1_ref[...]
        h = jnp.maximum(h, 0.0)
        s = jnp.dot(h, w2t_ref[...],
                    preferred_element_type=jnp.float32) + b2_ref[...]
        scale_ref[...] = jax.nn.sigmoid(s)


# ---------------------------------------------------------------------------
# Two-pass fallback, pass 2: x * scale with large lane-dense blocks.
# ---------------------------------------------------------------------------
def _excite_kernel(x_ref, s_ref, o_ref):
    # s_ref's block index is constant along the L grid axis, so its DMA is
    # elided after the first step of each batch block.
    o_ref[...] = (x_ref[...].astype(jnp.float32) * s_ref[...]).astype(o_ref.dtype)


def se_block(x, w_reduce, b_reduce, w_expand, b_expand, *, force_two_pass=False):
    """x: (B, C, L); w_reduce: (Cr, C); b_reduce: (Cr,); w_expand: (C, Cr);
    b_expand: (C,).  Matches SE_Block.forward (1x1 Conv1d == channel matmul)."""
    B, C, L = map(int, x.shape)
    Cr = int(w_reduce.shape[0])
    in_dtype = x.dtype
    itemsize = jnp.dtype(in_dtype).itemsize
    inv_l = 1.0 / L

    # Tiny parameters in f32, lane-dense layouts (biases as (1, *) rows).
    w1t = w_reduce.astype(jnp.float32).T              # (C, Cr)
    w2t = w_expand.astype(jnp.float32).T              # (Cr, C)
    b1 = b_reduce.astype(jnp.float32).reshape(1, Cr)
    b2 = b_expand.astype(jnp.float32).reshape(1, C)

    vmem_limit = _vmem_limit_bytes()
    budget = max(vmem_limit - (8 << 20), 8 << 20)     # headroom for weights/scratch

    # ------------------------------------------------------------------
    # Fused single-pass path: full-L slab resident -> x moved only 2x.
    # Per-batch-row cost: in+out blocks double-buffered (4*itemsize) plus
    # f32 working copies (~8 B/elem).
    # ------------------------------------------------------------------
    row_cost = C * L * (4 * itemsize + 8)
    if not force_two_pass and row_cost <= budget:
        bt_cap = max(1, budget // row_cost)
        bt_tgt = max(1, (8 << 20) // max(C * L * itemsize, 1))    # ~8 MiB x blocks
        Bt = _largest_divisor_tile(B, max(1, min(bt_cap, bt_tgt)), 1)

        return pl.pallas_call(
            functools.partial(_se_fused_kernel, inv_l=inv_l),
            out_shape=jax.ShapeDtypeStruct((B, C, L), in_dtype),
            grid_spec=pltpu.PrefetchScalarGridSpec(
                num_scalar_prefetch=0,
                grid=(B // Bt,),
                in_specs=[
                    pl.BlockSpec((Bt, C, L), lambda b: (b, 0, 0)),   # x slab
                    pl.BlockSpec((C, Cr), lambda b: (0, 0)),         # W1^T
                    pl.BlockSpec((1, Cr), lambda b: (0, 0)),         # b1
                    pl.BlockSpec((Cr, C), lambda b: (0, 0)),         # W2^T
                    pl.BlockSpec((1, C), lambda b: (0, 0)),          # b2
                ],
                out_specs=pl.BlockSpec((Bt, C, L), lambda b: (b, 0, 0)),
            ),
            compiler_params=pltpu.CompilerParams(
                # On v7x, pltpu.CORE_PARALLEL here would shard batch blocks
                # across the two TensorCores; kept "parallel" for portability.
                dimension_semantics=("parallel",),
                vmem_limit_bytes=vmem_limit,
            ),
        )(x, w1t, b1, w2t, b2)

    # ------------------------------------------------------------------
    # Two-pass fallback (full-L slab too large for VMEM).
    # ------------------------------------------------------------------
    target = (8 << 20) if budget >= (64 << 20) else (4 << 20)   # x-block bytes

    # Batch tile: (Bt, C) scale blocks need Bt % 8 == 0 or Bt == B.
    bt = _largest_divisor_tile(B, 8, 8)
    lt_tgt = max(128, target // max(itemsize * C * bt, 1))

    # Guard against awkward L: if it is not 128-aligned and too long for a
    # single full-L block, zero-pad (zeros do not change the sum; the mean
    # still divides by the true L; the padded tail is sliced off at the end).
    xp, L_pad = x, L
    if (L % 128 != 0) and (L > lt_tgt):
        L_pad = ((L + 511) // 512) * 512
        xp = jnp.pad(x, ((0, 0), (0, 0), (0, L_pad - L)))

    lt = _largest_divisor_tile(L_pad, lt_tgt, 128)
    nb, nl = B // bt, L_pad // lt

    scale = pl.pallas_call(
        functools.partial(_squeeze_fc_kernel, inv_l=inv_l),
        out_shape=jax.ShapeDtypeStruct((B, C), jnp.float32),
        grid_spec=pltpu.PrefetchScalarGridSpec(
            num_scalar_prefetch=0,
            grid=(nb, nl),
            in_specs=[
                pl.BlockSpec((bt, C, lt), lambda b, l: (b, 0, l)),   # x slab
                pl.BlockSpec((C, Cr), lambda b, l: (0, 0)),
                pl.BlockSpec((1, Cr), lambda b, l: (0, 0)),
                pl.BlockSpec((Cr, C), lambda b, l: (0, 0)),
                pl.BlockSpec((1, C), lambda b, l: (0, 0)),
            ],
            out_specs=pl.BlockSpec((bt, C), lambda b, l: (b, 0)),    # resident over L
            scratch_shapes=[pltpu.VMEM((bt, C, lt), jnp.float32)],   # lane-wide acc
        ),
        compiler_params=pltpu.CompilerParams(
            dimension_semantics=("parallel", "arbitrary"),
            vmem_limit_bytes=vmem_limit,
        ),
    )(xp, w1t, b1, w2t, b2)

    out = pl.pallas_call(
        _excite_kernel,
        out_shape=jax.ShapeDtypeStruct((B, C, L_pad), in_dtype),
        grid_spec=pltpu.PrefetchScalarGridSpec(
            num_scalar_prefetch=0,
            grid=(nb, nl),
            in_specs=[
                pl.BlockSpec((bt, C, lt), lambda b, l: (b, 0, l)),
                pl.BlockSpec((bt, C, 1), lambda b, l: (b, 0, 0)),    # scale, DMA elided over l
            ],
            out_specs=pl.BlockSpec((bt, C, lt), lambda b, l: (b, 0, l)),
        ),
        compiler_params=pltpu.CompilerParams(
            dimension_semantics=("parallel", "parallel"),
            vmem_limit_bytes=vmem_limit,
        ),
    )(xp, scale.reshape(B, C, 1))

    return out if L_pad == L else out[:, :, :L]


def se_block_ref(x, w_reduce, b_reduce, w_expand, b_expand):
    # Pure-JAX reference matching the PyTorch forward.
    pooled = jnp.mean(x.astype(jnp.float32), axis=-1, keepdims=True)   # (B, C, 1)
    h = jnp.einsum("rc,bcl->brl", w_reduce, pooled) + b_reduce[None, :, None]
    h = jnp.maximum(h, 0.0)
    s = jnp.einsum("cr,brl->bcl", w_expand, h) + b_expand[None, :, None]
    return (x.astype(jnp.float32) * jax.nn.sigmoid(s)).astype(x.dtype)


if __name__ == "__main__":
    # Module config: in_chs=8, reduction=4 -> reduced_chs=2
    B, C, L = 2, 8, 16
    Cr = C // 4

    key = jax.random.PRNGKey(0)
    kx, kw1, kb1, kw2, kb2 = jax.random.split(key, 5)
    x = jax.random.normal(kx, (B, C, L), dtype=jnp.float32)
    # Conv1d(in_chs, reduced_chs, 1) weight is (Cr, C, 1) -> kernel dim squeezed.
    w_reduce = jax.random.normal(kw1, (Cr, C), dtype=jnp.float32) * 0.3
    b_reduce = jax.random.normal(kb1, (Cr,), dtype=jnp.float32) * 0.1
    w_expand = jax.random.normal(kw2, (C, Cr), dtype=jnp.float32) * 0.3
    b_expand = jax.random.normal(kb2, (C,), dtype=jnp.float32) * 0.1

    # --- fused single-pass path (the common case) ---
    out = jax.block_until_ready(se_block(x, w_reduce, b_reduce, w_expand, b_expand))
    ref = se_block_ref(x, w_reduce, b_reduce, w_expand, b_expand)
    assert out.shape == (B, C, L)
    assert out.dtype == x.dtype
    assert jnp.allclose(out, ref, atol=1e-5, rtol=1e-5), "fused path mismatch vs reference"

    # --- two-pass fallback path (large-C*L regime), exercised at small size ---
    B2, L2 = 8, 256
    x2 = jax.random.normal(kx, (B2, C, L2), dtype=jnp.float32)
    out2 = jax.block_until_ready(
        se_block(x2, w_reduce, b_reduce, w_expand, b_expand, force_two_pass=True))
    ref2 = se_block_ref(x2, w_reduce, b_reduce, w_expand, b_expand)
    assert out2.shape == (B2, C, L2)
    assert out2.dtype == x2.dtype
    assert jnp.allclose(out2, ref2, atol=1e-5, rtol=1e-5), "two-pass path mismatch vs reference"

    print("KERNEL_OK")
</pallas_src>

<mosaic_0001>
module attributes {stable_mosaic.version = 11 : i64} {
  func.func @_se_fused_kernel(%arg0: i32, %arg1: memref<2x8x16xf32, #tpu.memory_space<vmem>>, %arg2: memref<8x2xf32, #tpu.memory_space<vmem>>, %arg3: memref<1x2xf32, #tpu.memory_space<vmem>>, %arg4: memref<2x8xf32, #tpu.memory_space<vmem>>, %arg5: memref<1x8xf32, #tpu.memory_space<vmem>>, %arg6: memref<2x8x16xf32, #tpu.memory_space<vmem>>) attributes {dimension_semantics = [#tpu.dimension_semantics<parallel>], iteration_bounds = array<i64: 1>, scalar_prefetch = 0 : i64, scratch_operands = 0 : i64, tpu.core_type = #tpu.core_type<tc>, window_params = [{transform_indices = @transform_0, window_bounds = array<i64: 2, 8, 16>}, {pipeline_mode = #tpu.pipeline_mode<synchronous>, transform_indices = @transform_1, window_bounds = array<i64: 8, 2>}, {pipeline_mode = #tpu.pipeline_mode<synchronous>, transform_indices = @transform_2, window_bounds = array<i64: 1, 2>}, {pipeline_mode = #tpu.pipeline_mode<synchronous>, transform_indices = @transform_3, window_bounds = array<i64: 2, 8>}, {pipeline_mode = #tpu.pipeline_mode<synchronous>, transform_indices = @transform_4, window_bounds = array<i64: 1, 8>}, {transform_indices = @transform_5, window_bounds = array<i64: 2, 8, 16>}]} {
    %c0 = arith.constant 0 : index
    %c0_0 = arith.constant 0 : index
    %c0_1 = arith.constant 0 : index
    %0 = vector.load %arg1[%c0, %c0_0, %c0_1] : memref<2x8x16xf32, #tpu.memory_space<vmem>>, vector<2x8x16xf32>
    %cst = arith.constant dense<0.000000e+00> : vector<2x8xf32>
    %1 = vector.multi_reduction <add>, %0, %cst [2] : vector<2x8x16xf32> to vector<2x8xf32>
    %cst_2 = arith.constant 6.250000e-02 : f32
    %2 = vector.broadcast %cst_2 : f32 to vector<2x8xf32>
    %3 = arith.mulf %1, %2 : vector<2x8xf32>
    %c0_3 = arith.constant 0 : index
    %c0_4 = arith.constant 0 : index
    %4 = vector.load %arg2[%c0_3, %c0_4] : memref<8x2xf32, #tpu.memory_space<vmem>>, vector<8x2xf32>
    %cst_5 = arith.constant dense<0.000000e+00> : vector<2x2xf32>
    %5 = tpu.matmul %3, %4, %cst_5 {dimension_numbers = #tpu.dot_dimension_numbers<[1], [0], [0], [1], [0, 0, 1, 1], [], []>} : vector<2x8xf32>, vector<8x2xf32>, vector<2x2xf32> -> vector<2x2xf32>
    %c0_6 = arith.constant 0 : index
    %c0_7 = arith.constant 0 : index
    %6 = vector.load %arg3[%c0_6, %c0_7] : memref<1x2xf32, #tpu.memory_space<vmem>>, vector<1x2xf32>
    %7 = vector.broadcast %6 : vector<1x2xf32> to vector<2x2xf32>
    %8 = arith.addf %5, %7 : vector<2x2xf32>
    %cst_8 = arith.constant 0.000000e+00 : f32
    %9 = vector.broadcast %cst_8 : f32 to vector<2x2xf32>
    %10 = arith.maximumf %8, %9 : vector<2x2xf32>
    %c0_9 = arith.constant 0 : index
    %c0_10 = arith.constant 0 : index
    %11 = vector.load %arg4[%c0_9, %c0_10] : memref<2x8xf32, #tpu.memory_space<vmem>>, vector<2x8xf32>
    %cst_11 = arith.constant dense<0.000000e+00> : vector<2x8xf32>
    %12 = tpu.matmul %10, %11, %cst_11 {dimension_numbers = #tpu.dot_dimension_numbers<[1], [0], [0], [1], [0, 0, 1, 1], [], []>} : vector<2x2xf32>, vector<2x8xf32>, vector<2x8xf32> -> vector<2x8xf32>
    %c0_12 = arith.constant 0 : index
    %c0_13 = arith.constant 0 : index
    %13 = vector.load %arg5[%c0_12, %c0_13] : memref<1x8xf32, #tpu.memory_space<vmem>>, vector<1x8xf32>
    %14 = vector.broadcast %13 : vector<1x8xf32> to vector<2x8xf32>
    %15 = arith.addf %12, %14 : vector<2x8xf32>
    %16 = arith.negf %15 : vector<2x8xf32>
    %17 = math.exp %16 : vector<2x8xf32>
    %cst_14 = arith.constant 1.000000e+00 : f32
    %18 = vector.broadcast %cst_14 : f32 to vector<2x8xf32>
    %19 = arith.addf %18, %17 : vector<2x8xf32>
    %20 = arith.divf %18, %19 : vector<2x8xf32>
    %21 = vector.shape_cast %20 : vector<2x8xf32> to vector<2x8x1xf32>
    %22 = vector.broadcast %21 : vector<2x8x1xf32> to vector<2x8x16xf32>
    %23 = arith.mulf %0, %22 : vector<2x8x16xf32>
    %c0_15 = arith.constant 0 : index
    %c0_16 = arith.constant 0 : index
    %c0_17 = arith.constant 0 : index
    %24 = vector.load %arg6[%c0_15, %c0_16, %c0_17] : memref<2x8x16xf32, #tpu.memory_space<vmem>>, vector<2x8x16xf32>
    tpu.vector_store %arg6[%c0_15, %c0_16, %c0_17], %23 {strides = array<i32>} : memref<2x8x16xf32, #tpu.memory_space<vmem>>, vector<2x8x16xf32>,
    return
  }
  func.func @transform_0(%arg0: i32) -> (i32, i32, i32) {
    %c0_i32 = arith.constant 0 : i32
    %c0_i32_0 = arith.constant 0 : i32
    %c0_i32_1 = arith.constant 0 : i32
    return %arg0, %c0_i32, %c0_i32_0 : i32, i32, i32
  }
  func.func @transform_1(%arg0: i32) -> (i32, i32) {
    %c0_i32 = arith.constant 0 : i32
    %c0_i32_0 = arith.constant 0 : i32
    %c0_i32_1 = arith.constant 0 : i32
    return %c0_i32, %c0_i32_0 : i32, i32
  }
  func.func @transform_2(%arg0: i32) -> (i32, i32) {
    %c0_i32 = arith.constant 0 : i32
    %c0_i32_0 = arith.constant 0 : i32
    %c0_i32_1 = arith.constant 0 : i32
    return %c0_i32, %c0_i32_0 : i32, i32
  }
  func.func @transform_3(%arg0: i32) -> (i32, i32) {
    %c0_i32 = arith.constant 0 : i32
    %c0_i32_0 = arith.constant 0 : i32
    %c0_i32_1 = arith.constant 0 : i32
    return %c0_i32, %c0_i32_0 : i32, i32
  }
  func.func @transform_4(%arg0: i32) -> (i32, i32) {
    %c0_i32 = arith.constant 0 : i32
    %c0_i32_0 = arith.constant 0 : i32
    %c0_i32_1 = arith.constant 0 : i32
    return %c0_i32, %c0_i32_0 : i32, i32
  }
  func.func @transform_5(%arg0: i32) -> (i32, i32, i32) {
    %c0_i32 = arith.constant 0 : i32
    %c0_i32_0 = arith.constant 0 : i32
    %c0_i32_1 = arith.constant 0 : i32
    return %arg0, %c0_i32, %c0_i32_0 : i32, i32, i32
  }
}

</mosaic_0001>

<bundles_post_ra>
// kernel: tpu_custom_call.1
= control target key start
LH: loop header
LB: loop body
LE: loop exit
PB: predicated region body
PF: predicated region fallthrough
CT: control target
= control target key end

     0   :  { %10 = vsyncpa [#allocation3], 0  ;;  %s304_s0 = inlined_call_operand.hbm [shape: f32[2,8,16], index: 0, kind: input, shape index: {}]   ;;  %s305_s1 = inlined_call_operand.vmem [shape: f32[8,2], index: 1, kind: input, shape index: {}]   ;;  %s306_s2 = inlined_call_operand.vmem [shape: f32[1,2], index: 2, kind: input, shape index: {}]   ;;  %s307_s3 = inlined_call_operand.vmem [shape: f32[2,8], index: 3, kind: input, shape index: {}]   ;;  %s308_s4 = inlined_call_operand.vmem [shape: f32[1,8], index: 4, kind: input, shape index: {}]   ;;  %s309_s5 = inlined_call_operand.hbm [shape: f32[2,8,16], index: 5, kind: output, shape index: {}]  }
   0x1   :  { %11 = vsyncpa [#allocation4], 0  ;;  %s16_s20 = sshll.u32 %s304_s0, 4  ;;  %s242_s21 = smov [#allocation2]   ;;  %s17_s20 = int_to_ptr.hbm [resolvable:$true] %s16_s20 }
   0x2   :  { %s18_s22 = sshll.u32 %s242_s21, 4  ;;  %s243_s23 = smov 128   ;;  %s19_s22 = int_to_ptr.vmem [resolvable:$true] %s18_s22 }
   0x3   :  { %s244_s24 = smov 8  }
   0x4   :  { %24 = dma.hbm_to_vmem [thread:$0]  %s17_s20, 256, %s19_s22, [#allocation3], %s243_s23, %s243_s23, %s244_s24  }
   0x5   :  { %238 = dma.done.wait [#allocation3], 256  }
   0x6   :  { %239 = vsyncadd [#allocation3], 4294967040  ;;  %vm39_vm0 = vcmask 130048   ;;  %v37_v0 = vld [vmem:[#allocation2] sm:$0xff]  ;;  %v38_v2 = vld [vmem:[#allocation2 + $0x8] sm:$0xff]  ;;  %v55_v6 = vlaneseq  ;;  %vm59_vm1 = vcmask 1041409  }
   0x7   :  { %v40_v1 = vsel %vm39_vm0, %v37_v0, 0.0  ;;  %v43_v3 = vsel %vm39_vm0, %v38_v2, 0.0  ;;  %v48_v4 = vld [vmem:[%s305_s1] sm:$0xff]  ;;  %vm61_vm2 = vcmask 64512   ;;  %vm94_vm3 = vcmask 1041408   ;;  %s161_s7 = sshll.u32 %s309_s5, 4  ;;  %s162_s7 = int_to_ptr.hbm [resolvable:$true] %s161_s7 }
   0x8   :  { %41 = vadd.xlane.f32.xlu0 %v40_v1  ;;  %79 = vmatpush.msra.mxu0 %v48_v4  ;;  %v56_v7 = vand.u32 127, %v55_v6  ;;  %v85_v14 = vld [vmem:[%s307_s3] sm:$0x3]  ;;  %vm90_vm4 = vcmask 15360   ;;  %v139_v19 = vshrl.u32 %v55_v6, 7 }
   0x9   :  { %175 = vmatpush.msk.msra.mxu1 %vm94_vm3, %v85_v14  ;;  %v184_v15 = vld [vmem:[%s306_s2] ss:$0 sm:$0xff]  ;;  %s245_s2 = smov [#allocation5]  }
   0xa   :  { %182 = vset.pattern.permute.xlu1 %v139_v19  ;;  %183 = vset.pattern.permute.xlu0 %v139_v19  ;;  %v185_v20 = vld [vmem:[%s308_s4] ss:$0 sm:$0xff]  ;;  %s159_s3 = sshll.u32 %s245_s2, 4  ;;  %s160_s3 = int_to_ptr.vmem [resolvable:$true] %s159_s3 }
  0x10   :  { %44 = vadd.xlane.f32.xlu0 %v43_v3 }
  0x7b   :  { %v42_v5 = vpop.xlane.xlu0 %41 }
  0x7c   :  { %v46_v8 = vmul.f32 0.0625, %v42_v5 }
  0x7e   :  { %v57_v11 = vperm.slane %v46_v8, %v56_v7 }
  0x83   :  { %v45_v9 = vpop.xlane.xlu0 %44 }
  0x84   :  { %v47_v10 = vmul.f32 0.0625, %v45_v9 }
  0x86   :  { %v58_v12 = vperm.slane %v47_v10, %v56_v7 }
  0x88   :  { %v60_v13 = vsel %vm59_vm1, %v58_v12, %v57_v11 }
  0x89   :  { %174 = vmatmul.msk.f32.vlgmr.msra.gmra.mxu0 %vm61_vm2, %v60_v13 }
 0x106   :  { %v81_v16 = vpop.f32.mrf.mxu0 }
 0x107   :  { %v82_v17 = vadd.f32 %v184_v15, %v81_v16 }
 0x109   :  { %v84_v18 = vmax.f32 %v82_v17, 0.0 }
 0x10b   :  { %176 = vmatmul.msk.f32.vlgmr.msra.gmra.mxu1 %vm90_vm4, %v84_v18 }
 0x188   :  { %v115_v21 = vpop.f32.mrf.mxu1 }
 0x189   :  { %v116_v22 = vadd.f32 %v185_v20, %v115_v21 }
 0x18b   :  { %v177_v23 = vmul.f32 -1.442695, %v116_v22 }
 0x18d   :  { %186 = vpow2.f32 %v177_v23 }
 0x193   :  { %v187_v24 = vpop.eup %186 }
 0x194   :  { %v121_v25 = vadd.f32 1.0, %v187_v24 }
 0x196   :  { %188 = vrcp.f32 %v121_v25  ;;  %v133_v29 = vand.u32 2147483648, %v121_v25  ;;  %v131_v31 = vand.u32 2147483647, %v121_v25  ;;  %vm127_vm6 = vweird.f32 %v121_v25 }
 0x198   :  { %v134_v33 = vor.u32 1.1754944e-38, %v133_v29  ;;  %vm132_vm8 = vcmp.eq.f32.partialorder %v131_v31, 8.507059e+37 }
 0x19c   :  { %v189_v26 = vpop.eup %188 }
 0x19d   :  { %v123_v27 = vmul.f32 %v189_v26, %v121_v25  ;;  %vm128_vm5 = vweird.f32 %v189_v26 }
 0x19e   :  { %vm129_vm7 = vmor %vm127_vm6, %vm128_vm5 }
 0x19f   :  { %v124_v28 = vsub.f32 1.0, %v123_v27 }
 0x1a1   :  { %v125_v30 = vmul.f32 %v189_v26, %v124_v28 }
 0x1a3   :  { %v126_v32 = vadd.f32 %v189_v26, %v125_v30 }
 0x1a5   :  { %v130_v34 = vsel %vm129_vm7, %v189_v26, %v126_v32 }
 0x1a6   :  { %v135_v35 = vsel %vm132_vm8, %v134_v33, %v130_v34 }
 0x1a7   :  { %v137_v36 = vperm.slane %v135_v35, 0  ;;  %v144_v37 = vperm.slane %v135_v35, 1 }
 0x1a9   :  { %142 = vperm.xlu1 %182, %v137_v36  }
 0x1b1   :  { %149 = vperm.xlu1 %182, %v144_v37  }
 0x21b   :  { %v143_v38 = vpop.permute.xlu1 %142 }
 0x21c   :  { %v151_v39 = vmul.f32 %v143_v38, %v37_v0 }
 0x21e   :  { %153 = vst.msk [vmem:[#allocation5] sm:$0xff] %vm39_vm0, %v151_v39 }
 0x223   :  { %v150_v40 = vpop.permute.xlu1 %149 }
 0x224   :  { %v152_v41 = vmul.f32 %v150_v40, %v38_v2 }
 0x226   :  { %154 = vst.msk [vmem:[#allocation5 + $0x8] sm:$0xff] %vm39_vm0, %v152_v41 }
 0x227   :  { %167 = dma.vmem_to_hbm [thread:$0]  %s160_s3, 256, %s162_s7, [#allocation4], %s243_s23, %s243_s23, %s244_s24  }
 0x228   :  { %240 = dma.done.wait [#allocation4], 256  }
 0x229   :  { %241 = vsyncadd [#allocation4], 4294967040 }
 0x22a   :  { %172 = vsyncpa [#allocation3], 1 }
 0x22b   :  { %173 = vsyncpa [#allocation4], 1 }

</bundles_post_ra>
